<compile_context>
chip_gen: v5e
topology: v5e:2x2
jax: 0.10.0
libtpu: 0.0.40
codegen_flags: <defaults>
</compile_context>

<pallas_src>
import functools

import jax
import jax.numpy as jnp
from jax import lax
from jax.experimental import pallas as pl
from jax.experimental.pallas import tpu as pltpu


def _splat_kernel(patch_ref, wconv_ref, bconv_ref, w1_ref, b1_ref, w2_ref,
                  b2_ref, out_ref, *, radix, channels, kg, bt, p, inv_p,
                  block_diag):
    # ---- grouped conv (+ bias, ReLU) on the MXU.
    #      rows = radix*channels, columns = bt*P (batch folded into N). ----
    if block_diag:
        # Single block-diagonal dot: radix*Kg fits one MXU K-tile, so merging
        # the radix groups halves the vmatmul push/pop (MRF/MRB) sequences.
        acts = jnp.dot(wconv_ref[...], patch_ref[...],
                       preferred_element_type=jnp.float32)          # (rc, bt*P)
        acts = jnp.maximum(acts + bconv_ref[...], 0.0)
    else:
        # Per-group dots once radix*Kg exceeds one MXU K-tile (128).
        bc = bconv_ref[...]
        rows = []
        for r in range(radix):
            pr = jnp.dot(wconv_ref[r], patch_ref[r * kg:(r + 1) * kg, :],
                         preferred_element_type=jnp.float32)        # (channels, bt*P)
            rows.append(jnp.maximum(pr + bc[r * channels:(r + 1) * channels],
                                    0.0))
        acts = jnp.concatenate(rows, axis=0)                        # (rc, bt*P)

    # ---- radix split+sum, then per-image global average pool
    #      (one lane reduction per image column slab). ----
    sp = acts[0:channels]
    for r in range(1, radix):
        sp = sp + acts[r * channels:(r + 1) * channels]             # (channels, bt*P)
    gcols = [jnp.sum(sp[:, bl * p:(bl + 1) * p], axis=1, keepdims=True)
             for bl in range(bt)]                                   # bt x (channels, 1)
    gap_cb = gcols[0] if bt == 1 else jnp.concatenate(gcols, axis=1)  # (channels, bt)
    gap_bc = gap_cb.T * inv_p                                       # (bt, channels) lane-major

    # ---- fc1 -> ReLU -> fc2 (lane-dense: channels / inter / radix*channels on N). ----
    h = jnp.dot(gap_bc, w1_ref[...],
                preferred_element_type=jnp.float32) + b1_ref[...]   # (bt, inter)
    h = jnp.maximum(h, 0.0)
    logits = jnp.dot(h, w2_ref[...],
                     preferred_element_type=jnp.float32) + b2_ref[...]  # (bt, radix*channels)

    # ---- rSoftMax (cardinality == 1): softmax across radix, per channel. ----
    if radix > 1:
        lgs = [logits[:, r * channels:(r + 1) * channels] for r in range(radix)]
        m = lgs[0]
        for r in range(1, radix):
            m = jnp.maximum(m, lgs[r])
        exps = [jnp.exp(l - m) for l in lgs]
        den = exps[0]
        for r in range(1, radix):
            den = den + exps[r]
        inv = pl.reciprocal(den, approx=True)                       # EUP slot, ~free
        atts = [e * inv for e in exps]                              # radix x (bt, channels)
    else:
        # Module uses sigmoid when radix == 1.
        atts = [jax.nn.sigmoid(logits)]                             # (bt, channels)

    # ---- attention-weighted radix sum; lane-dense (channels, P) store per image. ----
    atts_cb = [a.T for a in atts]                                   # radix x (channels, bt)
    for bl in range(bt):
        o = atts_cb[0][:, bl:bl + 1] * acts[0:channels, bl * p:(bl + 1) * p]
        for r in range(1, radix):
            o = o + (atts_cb[r][:, bl:bl + 1]
                     * acts[r * channels:(r + 1) * channels, bl * p:(bl + 1) * p])
        out_ref[bl] = o.astype(out_ref.dtype)


def _im2col_grouped_t(x, kh, kw, stride, padding, dilation, groups):
    """NCHW input -> (B, groups, Kg, P) patches, Kg ordered (c_local, i, j),
    spatial P = Ho*Wo on the last axis."""
    B, C, H, W = x.shape
    sh, sw = stride
    ph, pw = padding
    dh, dw = dilation
    Ho = (H + 2 * ph - dh * (kh - 1) - 1) // sh + 1
    Wo = (W + 2 * pw - dw * (kw - 1) - 1) // sw + 1
    xp = jnp.pad(x, ((0, 0), (0, 0), (ph, ph), (pw, pw)))
    cols = []
    for i in range(kh):
        for j in range(kw):
            cols.append(xp[:, :, i * dh:i * dh + sh * Ho:sh,
                              j * dw:j * dw + sw * Wo:sw].reshape(B, C, Ho * Wo))
    p = jnp.stack(cols, axis=2)                          # (B, C, kh*kw, P)
    cin_g = C // groups
    p = p.reshape(B, groups, cin_g * kh * kw, Ho * Wo)   # K order = c_local*kh*kw + i*kw + j
    return p, Ho, Wo


def _pick_batch_tile(batch, p, max_lanes=2048):
    """Largest divisor of `batch` with bt*P <= max_lanes lanes per grid step."""
    bt = 1
    for cand in range(1, batch + 1):
        if batch % cand == 0 and cand * p <= max_lanes:
            bt = cand
    return bt


def splat_conv2d(x, params, *, radix, cardinality, channels, kernel_size,
                 stride, padding, dilation, out_dtype=jnp.float32):
    # TODO(synk): cardinality > 1 (grouped fc1/fc2 + interleaved rSoftMax) not implemented.
    assert cardinality == 1
    B, Cin, H, W = x.shape
    kh, kw = kernel_size
    groups_conv = radix * cardinality
    cin_g = Cin // groups_conv
    kg = cin_g * kh * kw
    rk = radix * kg
    rc = radix * channels

    # TODO(synk): at ResNeSt-scale shapes, build the patches in-kernel from a
    # halo'd NCHW input tile (im2col inflates HBM reads ~kh*kw-fold), tile P
    # with a two-pass GAP/attention structure so residency fits v7x's 64 MiB
    # VMEM, and re-introduce a 'parallel' grid axis over batch/P tiles so both
    # v7x TensorCores stay busy. Pass out_dtype=jnp.bfloat16 (and cast splits
    # to bf16 after ReLU) when the consumer tolerates it to halve writeback.
    patches, Ho, Wo = _im2col_grouped_t(x, kh, kw, stride, padding, dilation,
                                        groups_conv)
    P = Ho * Wo
    bt = _pick_batch_tile(B, P)
    nb = B // bt

    # Fold `bt` images into the matmul N axis: (nb, rk, bt*P), image-major columns.
    patches = patches.reshape(B, rk, P).astype(jnp.bfloat16)
    patches = patches.reshape(nb, bt, rk, P).transpose(0, 2, 1, 3).reshape(
        nb, rk, bt * P)

    wc = params["conv_w"].reshape(radix, channels, kg).astype(jnp.bfloat16)
    block_diag = rk <= 128   # merge radix groups while K fits one MXU K-tile
    if block_diag:
        w_conv = jnp.zeros((rc, rk), jnp.bfloat16)
        for r in range(radix):
            w_conv = w_conv.at[r * channels:(r + 1) * channels,
                               r * kg:(r + 1) * kg].set(wc[r])
        wconv_spec = pl.BlockSpec((rc, rk), lambda b: (0, 0))
    else:
        w_conv = wc
        wconv_spec = pl.BlockSpec((radix, channels, kg), lambda b: (0, 0, 0))
    bconv = params["conv_b"].reshape(rc, 1).astype(jnp.float32)

    inter = params["fc1_w"].shape[0]
    # fc weights pre-transposed so the in-kernel tail is lane-dense.
    w1t = params["fc1_w"].reshape(inter, channels).T.astype(jnp.float32)   # (channels, inter)
    b1 = params["fc1_b"].reshape(1, inter).astype(jnp.float32)
    w2t = params["fc2_w"].reshape(rc, inter).T.astype(jnp.float32)         # (inter, rc)
    b2 = params["fc2_b"].reshape(1, rc).astype(jnp.float32)

    kernel = functools.partial(_splat_kernel, radix=radix, channels=channels,
                               kg=kg, bt=bt, p=P, inv_p=1.0 / P,
                               block_diag=block_diag)
    out = pl.pallas_call(
        kernel,
        out_shape=jax.ShapeDtypeStruct((B, channels, P), out_dtype),
        grid=(nb,),
        in_specs=[
            pl.BlockSpec((None, rk, bt * P), lambda b: (b, 0, 0)),
            wconv_spec,
            pl.BlockSpec((rc, 1), lambda b: (0, 0)),
            pl.BlockSpec((channels, inter), lambda b: (0, 0)),
            pl.BlockSpec((1, inter), lambda b: (0, 0)),
            pl.BlockSpec((inter, rc), lambda b: (0, 0)),
            pl.BlockSpec((1, rc), lambda b: (0, 0)),
        ],
        out_specs=pl.BlockSpec((bt, channels, P), lambda b: (b, 0, 0)),
        compiler_params=pltpu.CompilerParams(
            dimension_semantics=("parallel",),
            vmem_limit_bytes=32 * 1024 * 1024),
    )(patches, w_conv, bconv, w1t, b1, w2t, b2)

    # (B, channels, P) -> NCHW: pure reshape, no transpose needed.
    return out.reshape(B, channels, Ho, Wo)


def reference(x, params, *, radix, cardinality, channels, stride, padding, dilation):
    """Pure-JAX (f32) mirror of the PyTorch SplAtConv2d.forward (bias=True, no BN)."""
    B = x.shape[0]
    conv = lax.conv_general_dilated(
        x, params["conv_w"], window_strides=stride,
        padding=[(padding[0], padding[0]), (padding[1], padding[1])],
        rhs_dilation=dilation, feature_group_count=radix * cardinality,
        dimension_numbers=("NCHW", "OIHW", "NCHW"))
    conv = conv + params["conv_b"][None, :, None, None]
    conv = jnp.maximum(conv, 0.0)
    splits = [conv[:, r * channels:(r + 1) * channels] for r in range(radix)]
    gap = sum(splits)
    gap = jnp.mean(gap, axis=(2, 3))                           # adaptive_avg_pool2d(.,1)
    inter = params["fc1_w"].shape[0]
    h = jnp.maximum(gap @ params["fc1_w"].reshape(inter, channels).T + params["fc1_b"], 0.0)
    logits = h @ params["fc2_w"].reshape(channels * radix, inter).T + params["fc2_b"]
    if radix > 1:
        att = jax.nn.softmax(
            logits.reshape(B, cardinality, radix, -1).transpose(0, 2, 1, 3), axis=1)
        att = att.reshape(B, radix * channels)
    else:
        att = jax.nn.sigmoid(logits)
    out = sum(att[:, r * channels:(r + 1) * channels][:, :, None, None] * splits[r]
              for r in range(radix))
    return out


if __name__ == "__main__":
    # Module config: SplAtConv2d(in_channels=4, channels=8, kernel_size=3,
    #   stride=1, padding=1, groups=1, bias=True, radix=2, norm_layer=None)
    B, Cin, H, W = 2, 4, 16, 16          # H*W = 256 -> lane-dense slabs
    channels = 8
    radix, cardinality = 2, 1
    reduction_factor = 4
    inter = max(Cin * radix // reduction_factor, 32)           # = 32
    kernel_size, stride, padding, dilation = (3, 3), (1, 1), (1, 1), (1, 1)

    key = jax.random.PRNGKey(0)
    ks = jax.random.split(key, 7)
    params = {
        "conv_w": jax.random.normal(
            ks[0], (channels * radix, Cin // (radix * cardinality), 3, 3), jnp.float32) * 0.2,
        "conv_b": jax.random.normal(ks[1], (channels * radix,), jnp.float32) * 0.1,
        "fc1_w": jax.random.normal(ks[2], (inter, channels, 1, 1), jnp.float32) * 0.2,
        "fc1_b": jax.random.normal(ks[3], (inter,), jnp.float32) * 0.1,
        "fc2_w": jax.random.normal(ks[4], (channels * radix, inter, 1, 1), jnp.float32) * 0.2,
        "fc2_b": jax.random.normal(ks[5], (channels * radix,), jnp.float32) * 0.1,
    }
    x = jax.random.normal(ks[6], (B, Cin, H, W), jnp.float32)

    out = splat_conv2d(x, params, radix=radix, cardinality=cardinality,
                       channels=channels, kernel_size=kernel_size,
                       stride=stride, padding=padding, dilation=dilation)
    out = jax.block_until_ready(out)

    ref = reference(x, params, radix=radix, cardinality=cardinality,
                    channels=channels, stride=stride, padding=padding,
                    dilation=dilation)

    assert out.shape == (B, channels, H, W)
    # bf16 conv operands (f32 accumulation): allow ~bf16-level relative error.
    err = float(jnp.max(jnp.abs(out - ref) / (1.0 + jnp.abs(ref))))
    if err < 5e-2:
        print("KERNEL_OK")
    else:
        print("MISMATCH", err)
</pallas_src>

<mosaic_0001>
module attributes {stable_mosaic.version = 11 : i64} {
  func.func @_splat_kernel(%arg0: i32, %arg1: memref<1x36x512xbf16, #tpu.memory_space<vmem>>, %arg2: memref<16x36xbf16, #tpu.memory_space<vmem>>, %arg3: memref<16x1xf32, #tpu.memory_space<vmem>>, %arg4: memref<8x32xf32, #tpu.memory_space<vmem>>, %arg5: memref<1x32xf32, #tpu.memory_space<vmem>>, %arg6: memref<32x16xf32, #tpu.memory_space<vmem>>, %arg7: memref<1x16xf32, #tpu.memory_space<vmem>>, %arg8: memref<2x8x256xf32, #tpu.memory_space<vmem>>) attributes {dimension_semantics = [#tpu.dimension_semantics<parallel>], iteration_bounds = array<i64: 1>, scalar_prefetch = 0 : i64, scratch_operands = 0 : i64, tpu.core_type = #tpu.core_type<tc>, window_params = [{transform_indices = @transform_0, window_bounds = array<i64: 1, 36, 512>}, {pipeline_mode = #tpu.pipeline_mode<synchronous>, transform_indices = @transform_1, window_bounds = array<i64: 16, 36>}, {pipeline_mode = #tpu.pipeline_mode<synchronous>, transform_indices = @transform_2, window_bounds = array<i64: 16, 1>}, {pipeline_mode = #tpu.pipeline_mode<synchronous>, transform_indices = @transform_3, window_bounds = array<i64: 8, 32>}, {pipeline_mode = #tpu.pipeline_mode<synchronous>, transform_indices = @transform_4, window_bounds = array<i64: 1, 32>}, {pipeline_mode = #tpu.pipeline_mode<synchronous>, transform_indices = @transform_5, window_bounds = array<i64: 32, 16>}, {pipeline_mode = #tpu.pipeline_mode<synchronous>, transform_indices = @transform_6, window_bounds = array<i64: 1, 16>}, {transform_indices = @transform_7, window_bounds = array<i64: 2, 8, 256>}]} {
    %c0 = arith.constant 0 : index
    %c0_0 = arith.constant 0 : index
    %0 = vector.load %arg2[%c0, %c0_0] : memref<16x36xbf16, #tpu.memory_space<vmem>>, vector<16x36xbf16>
    %c0_1 = arith.constant 0 : index
    %c0_2 = arith.constant 0 : index
    %c0_3 = arith.constant 0 : index
    %1 = vector.load %arg1[%c0_1, %c0_2, %c0_3] : memref<1x36x512xbf16, #tpu.memory_space<vmem>>, vector<1x36x512xbf16>
    %2 = vector.shape_cast %1 : vector<1x36x512xbf16> to vector<36x512xbf16>
    %cst = arith.constant dense<0.000000e+00> : vector<16x512xf32>
    %3 = tpu.matmul %0, %2, %cst {dimension_numbers = #tpu.dot_dimension_numbers<[1], [0], [0], [1], [0, 0, 1, 1], [], []>} : vector<16x36xbf16>, vector<36x512xbf16>, vector<16x512xf32> -> vector<16x512xf32>
    %c0_4 = arith.constant 0 : index
    %c0_5 = arith.constant 0 : index
    %4 = vector.load %arg3[%c0_4, %c0_5] : memref<16x1xf32, #tpu.memory_space<vmem>>, vector<16x1xf32>
    %5 = vector.broadcast %4 : vector<16x1xf32> to vector<16x512xf32>
    %6 = arith.addf %3, %5 : vector<16x512xf32>
    %cst_6 = arith.constant 0.000000e+00 : f32
    %7 = vector.broadcast %cst_6 : f32 to vector<16x512xf32>
    %8 = arith.maximumf %6, %7 : vector<16x512xf32>
    %9 = vector.extract_strided_slice %8 {offsets = [0, 0], sizes = [8, 512], strides = [1, 1]} : vector<16x512xf32> to vector<8x512xf32>
    %10 = vector.extract_strided_slice %8 {offsets = [8, 0], sizes = [8, 512], strides = [1, 1]} : vector<16x512xf32> to vector<8x512xf32>
    %11 = arith.addf %9, %10 : vector<8x512xf32>
    %12 = vector.extract_strided_slice %11 {offsets = [0, 0], sizes = [8, 256], strides = [1, 1]} : vector<8x512xf32> to vector<8x256xf32>
    %cst_7 = arith.constant dense<0.000000e+00> : vector<8xf32>
    %13 = vector.multi_reduction <add>, %12, %cst_7 [1] : vector<8x256xf32> to vector<8xf32>
    %14 = vector.shape_cast %13 : vector<8xf32> to vector<8x1xf32>
    %15 = vector.extract_strided_slice %11 {offsets = [0, 256], sizes = [8, 256], strides = [1, 1]} : vector<8x512xf32> to vector<8x256xf32>
    %cst_8 = arith.constant dense<0.000000e+00> : vector<8xf32>
    %16 = vector.multi_reduction <add>, %15, %cst_8 [1] : vector<8x256xf32> to vector<8xf32>
    %17 = vector.shape_cast %16 : vector<8xf32> to vector<8x1xf32>
    %18 = tpu.concatenate %14, %17 in 1 : vector<8x1xf32>, vector<8x1xf32> -> vector<8x2xf32>
    %19 = tpu.transpose %18, [1, 0] : vector<8x2xf32> -> vector<2x8xf32>
    %cst_9 = arith.constant 3.906250e-03 : f32
    %20 = vector.broadcast %cst_9 : f32 to vector<2x8xf32>
    %21 = arith.mulf %19, %20 : vector<2x8xf32>
    %c0_10 = arith.constant 0 : index
    %c0_11 = arith.constant 0 : index
    %22 = vector.load %arg4[%c0_10, %c0_11] : memref<8x32xf32, #tpu.memory_space<vmem>>, vector<8x32xf32>
    %cst_12 = arith.constant dense<0.000000e+00> : vector<2x32xf32>
    %23 = tpu.matmul %21, %22, %cst_12 {dimension_numbers = #tpu.dot_dimension_numbers<[1], [0], [0], [1], [0, 0, 1, 1], [], []>} : vector<2x8xf32>, vector<8x32xf32>, vector<2x32xf32> -> vector<2x32xf32>
    %c0_13 = arith.constant 0 : index
    %c0_14 = arith.constant 0 : index
    %24 = vector.load %arg5[%c0_13, %c0_14] : memref<1x32xf32, #tpu.memory_space<vmem>>, vector<1x32xf32>
    %25 = vector.broadcast %24 : vector<1x32xf32> to vector<2x32xf32>
    %26 = arith.addf %23, %25 : vector<2x32xf32>
    %cst_15 = arith.constant 0.000000e+00 : f32
    %27 = vector.broadcast %cst_15 : f32 to vector<2x32xf32>
    %28 = arith.maximumf %26, %27 : vector<2x32xf32>
    %c0_16 = arith.constant 0 : index
    %c0_17 = arith.constant 0 : index
    %29 = vector.load %arg6[%c0_16, %c0_17] : memref<32x16xf32, #tpu.memory_space<vmem>>, vector<32x16xf32>
    %cst_18 = arith.constant dense<0.000000e+00> : vector<2x16xf32>
    %30 = tpu.matmul %28, %29, %cst_18 {dimension_numbers = #tpu.dot_dimension_numbers<[1], [0], [0], [1], [0, 0, 1, 1], [], []>} : vector<2x32xf32>, vector<32x16xf32>, vector<2x16xf32> -> vector<2x16xf32>
    %c0_19 = arith.constant 0 : index
    %c0_20 = arith.constant 0 : index
    %31 = vector.load %arg7[%c0_19, %c0_20] : memref<1x16xf32, #tpu.memory_space<vmem>>, vector<1x16xf32>
    %32 = vector.broadcast %31 : vector<1x16xf32> to vector<2x16xf32>
    %33 = arith.addf %30, %32 : vector<2x16xf32>
    %34 = vector.extract_strided_slice %33 {offsets = [0, 0], sizes = [2, 8], strides = [1, 1]} : vector<2x16xf32> to vector<2x8xf32>
    %35 = vector.extract_strided_slice %33 {offsets = [0, 8], sizes = [2, 8], strides = [1, 1]} : vector<2x16xf32> to vector<2x8xf32>
    %36 = arith.maximumf %34, %35 : vector<2x8xf32>
    %37 = arith.subf %34, %36 : vector<2x8xf32>
    %38 = math.exp %37 : vector<2x8xf32>
    %39 = arith.subf %35, %36 : vector<2x8xf32>
    %40 = math.exp %39 : vector<2x8xf32>
    %41 = arith.addf %38, %40 : vector<2x8xf32>
    %42 = tpu.reciprocal %41 {approx = true} : vector<2x8xf32> -> vector<2x8xf32>
    %43 = arith.mulf %38, %42 : vector<2x8xf32>
    %44 = arith.mulf %40, %42 : vector<2x8xf32>
    %45 = tpu.transpose %43, [1, 0] : vector<2x8xf32> -> vector<8x2xf32>
    %46 = tpu.transpose %44, [1, 0] : vector<2x8xf32> -> vector<8x2xf32>
    %47 = vector.extract_strided_slice %45 {offsets = [0, 0], sizes = [8, 1], strides = [1, 1]} : vector<8x2xf32> to vector<8x1xf32>
    %48 = vector.extract_strided_slice %8 {offsets = [0, 0], sizes = [8, 256], strides = [1, 1]} : vector<16x512xf32> to vector<8x256xf32>
    %49 = vector.broadcast %47 : vector<8x1xf32> to vector<8x256xf32>
    %50 = arith.mulf %49, %48 : vector<8x256xf32>
    %51 = vector.extract_strided_slice %46 {offsets = [0, 0], sizes = [8, 1], strides = [1, 1]} : vector<8x2xf32> to vector<8x1xf32>
    %52 = vector.extract_strided_slice %8 {offsets = [8, 0], sizes = [8, 256], strides = [1, 1]} : vector<16x512xf32> to vector<8x256xf32>
    %53 = vector.broadcast %51 : vector<8x1xf32> to vector<8x256xf32>
    %54 = arith.mulf %53, %52 : vector<8x256xf32>
    %55 = arith.addf %50, %54 : vector<8x256xf32>
    %c0_21 = arith.constant 0 : index
    %c0_22 = arith.constant 0 : index
    %c0_23 = arith.constant 0 : index
    %56 = vector.load %arg8[%c0_21, %c0_22, %c0_23] : memref<2x8x256xf32, #tpu.memory_space<vmem>>, vector<1x8x256xf32>
    %57 = vector.shape_cast %56 : vector<1x8x256xf32> to vector<8x256xf32>
    %58 = vector.shape_cast %55 : vector<8x256xf32> to vector<1x8x256xf32>
    tpu.vector_store %arg8[%c0_21, %c0_22, %c0_23], %58 {strides = array<i32>} : memref<2x8x256xf32, #tpu.memory_space<vmem>>, vector<1x8x256xf32>,
    %59 = vector.extract_strided_slice %45 {offsets = [0, 1], sizes = [8, 1], strides = [1, 1]} : vector<8x2xf32> to vector<8x1xf32>
    %60 = vector.extract_strided_slice %8 {offsets = [0, 256], sizes = [8, 256], strides = [1, 1]} : vector<16x512xf32> to vector<8x256xf32>
    %61 = vector.broadcast %59 : vector<8x1xf32> to vector<8x256xf32>
    %62 = arith.mulf %61, %60 : vector<8x256xf32>
    %63 = vector.extract_strided_slice %46 {offsets = [0, 1], sizes = [8, 1], strides = [1, 1]} : vector<8x2xf32> to vector<8x1xf32>
    %64 = vector.extract_strided_slice %8 {offsets = [8, 256], sizes = [8, 256], strides = [1, 1]} : vector<16x512xf32> to vector<8x256xf32>
    %65 = vector.broadcast %63 : vector<8x1xf32> to vector<8x256xf32>
    %66 = arith.mulf %65, %64 : vector<8x256xf32>
    %67 = arith.addf %62, %66 : vector<8x256xf32>
    %c1 = arith.constant 1 : index
    %c0_24 = arith.constant 0 : index
    %c0_25 = arith.constant 0 : index
    %68 = vector.load %arg8[%c1, %c0_24, %c0_25] : memref<2x8x256xf32, #tpu.memory_space<vmem>>, vector<1x8x256xf32>
    %69 = vector.shape_cast %68 : vector<1x8x256xf32> to vector<8x256xf32>
    %70 = vector.shape_cast %67 : vector<8x256xf32> to vector<1x8x256xf32>
    tpu.vector_store %arg8[%c1, %c0_24, %c0_25], %70 {strides = array<i32>} : memref<2x8x256xf32, #tpu.memory_space<vmem>>, vector<1x8x256xf32>,
    return
  }
  func.func @transform_0(%arg0: i32) -> (i32, i32, i32) {
    %c0_i32 = arith.constant 0 : i32
    %c0_i32_0 = arith.constant 0 : i32
    %c0_i32_1 = arith.constant 0 : i32
    return %arg0, %c0_i32, %c0_i32_0 : i32, i32, i32
  }
  func.func @transform_1(%arg0: i32) -> (i32, i32) {
    %c0_i32 = arith.constant 0 : i32
    %c0_i32_0 = arith.constant 0 : i32
    %c0_i32_1 = arith.constant 0 : i32
    return %c0_i32, %c0_i32_0 : i32, i32
  }
  func.func @transform_2(%arg0: i32) -> (i32, i32) {
    %c0_i32 = arith.constant 0 : i32
    %c0_i32_0 = arith.constant 0 : i32
    %c0_i32_1 = arith.constant 0 : i32
    return %c0_i32, %c0_i32_0 : i32, i32
  }
  func.func @transform_3(%arg0: i32) -> (i32, i32) {
    %c0_i32 = arith.constant 0 : i32
    %c0_i32_0 = arith.constant 0 : i32
    %c0_i32_1 = arith.constant 0 : i32
    return %c0_i32, %c0_i32_0 : i32, i32
  }
  func.func @transform_4(%arg0: i32) -> (i32, i32) {
    %c0_i32 = arith.constant 0 : i32
    %c0_i32_0 = arith.constant 0 : i32
    %c0_i32_1 = arith.constant 0 : i32
    return %c0_i32, %c0_i32_0 : i32, i32
  }
  func.func @transform_5(%arg0: i32) -> (i32, i32) {
    %c0_i32 = arith.constant 0 : i32
    %c0_i32_0 = arith.constant 0 : i32
    %c0_i32_1 = arith.constant 0 : i32
    return %c0_i32, %c0_i32_0 : i32, i32
  }
  func.func @transform_6(%arg0: i32) -> (i32, i32) {
    %c0_i32 = arith.constant 0 : i32
    %c0_i32_0 = arith.constant 0 : i32
    %c0_i32_1 = arith.constant 0 : i32
    return %c0_i32, %c0_i32_0 : i32, i32
  }
  func.func @transform_7(%arg0: i32) -> (i32, i32, i32) {
    %c0_i32 = arith.constant 0 : i32
    %c0_i32_0 = arith.constant 0 : i32
    %c0_i32_1 = arith.constant 0 : i32
    return %arg0, %c0_i32, %c0_i32_0 : i32, i32, i32
  }
}

</mosaic_0001>

<bundles_post_ra>
// kernel: tpu_custom_call.1
= control target key start
LH: loop header
LB: loop body
LE: loop exit
PB: predicated region body
PF: predicated region fallthrough
CT: control target
= control target key end

     0   :  { %12 = vsyncpa [#allocation3], 0  ;;  %s736_s0 = inlined_call_operand.hbm [shape: bf16[1,36,512], index: 0, kind: input, shape index: {}]   ;;  %s737_s1 = inlined_call_operand.vmem [shape: bf16[16,36], index: 1, kind: input, shape index: {}]   ;;  %s738_s2 = inlined_call_operand.vmem [shape: f32[16,1], index: 2, kind: input, shape index: {}]   ;;  %s739_s3 = inlined_call_operand.vmem [shape: f32[8,32], index: 3, kind: input, shape index: {}]   ;;  %s740_s4 = inlined_call_operand.vmem [shape: f32[1,32], index: 4, kind: input, shape index: {}]   ;;  %s741_s5 = inlined_call_operand.vmem [shape: f32[32,16], index: 5, kind: input, shape index: {}]   ;;  %s742_s6 = inlined_call_operand.vmem [shape: f32[1,16], index: 6, kind: input, shape index: {}]   ;;  %s743_s7 = inlined_call_operand.hbm [shape: f32[2,8,256], index: 7, kind: output, shape index: {}]  }
   0x1   :  { %13 = vsyncpa [#allocation4], 0  ;;  %s18_s26 = sshll.u32 %s736_s0, 4  ;;  %s584_s27 = smov [#allocation2]   ;;  %s19_s26 = int_to_ptr.hbm [resolvable:$true] %s18_s26 }
   0x2   :  { %s20_s28 = sshll.u32 %s584_s27, 4  ;;  %s585_s29 = smov 256   ;;  %s21_s28 = int_to_ptr.vmem [resolvable:$true] %s20_s28 }
   0x3   :  { %s586_s30 = smov 16  }
   0x4   :  { %26 = dma.hbm_to_vmem [thread:$0]  %s19_s26, 1280, %s21_s28, [#allocation3], %s585_s29, %s585_s29, %s586_s30  }
   0x5   :  { %580 = dma.done.wait [#allocation3], 1280  }
   0x6   :  { %581 = vsyncadd [#allocation3], 4294966016  ;;  %v587_v0 = vmov 0   ;;  %v54_v1 = vld [vmem:[#allocation2 + $0x40] sm:$0x33]  ;;  %vm127_vm0 = vcmask 1041408  }
   0x7   :  { %520 = vset.pattern.permute.xlu0 %v587_v0  ;;  %v55_v2 = vld [vmem:[#allocation2 + $0x48] sm:$0x33]  ;;  %v99_v3 = vunpack.c.l.b16 %v54_v1  ;;  %v100_v4 = vunpack.c.h.b16 %v54_v1  ;;  %v482_v7 = vld [vmem:[#allocation2 + $0x20] sm:$0xf]  ;;  %v509_v8 = vld [vmem:[#allocation2 + $0x2c] sm:$0xf0] }
   0x8   :  { %v101_v5 = vunpack.c.l.b16 %v55_v2  ;;  %v102_v6 = vunpack.c.h.b16 %v55_v2  ;;  %v507_v13 = vld [vmem:[#allocation2 + $0x24] sm:$0xf]  ;;  %v484_v14 = vld [vmem:[#allocation2 + $0x30] sm:$0xf0]  ;;  %v490_v15 = vld [vmem:[#allocation2 + $0x28] sm:$0xf]  ;;  %v483_v25 = vor.u32 %v509_v8, %v482_v7 }
   0x9   :  { %v111_v9 = vpack.c.b16 %v99_v3, %v99_v3  ;;  %v112_v10 = vpack.c.b16 %v100_v4, %v100_v4  ;;  %v510_v16 = vld [vmem:[#allocation2 + $0x34] sm:$0xf0]  ;;  %v508_v17 = vld [vmem:[#allocation2 + $0x2c] sm:$0xf]  ;;  %v492_v18 = vld [vmem:[#allocation2 + $0x38] sm:$0xf0]  ;;  %v487_v26 = vor.u32 %v507_v13, %v484_v14 }
   0xa   :  { %v113_v11 = vpack.c.b16 %v101_v5, %v101_v5  ;;  %v114_v12 = vpack.c.b16 %v102_v6, %v102_v6  ;;  %v466_v23 = vld [vmem:[#allocation2] sm:$0xf]  ;;  %v505_v24 = vld [vmem:[#allocation2 + $0xc] sm:$0xf0]  ;;  %v503_v27 = vld [vmem:[#allocation2 + $0x4] sm:$0xf]  ;;  %v491_v30 = vor.u32 %v510_v16, %v490_v15  ;;  %v495_v31 = vor.u32 %v508_v17, %v492_v18 }
   0xb   :  { %v129_v19 = vsel %vm127_vm0, %v111_v9, 0  ;;  %v132_v20 = vsel %vm127_vm0, %v112_v10, 0  ;;  %v468_v28 = vld [vmem:[#allocation2 + $0x10] sm:$0xf0]  ;;  %v474_v29 = vld [vmem:[#allocation2 + $0x8] sm:$0xf]  ;;  %v467_v36 = vor.u32 %v505_v24, %v466_v23 }
   0xc   :  { %v135_v21 = vsel %vm127_vm0, %v113_v11, 0  ;;  %v138_v22 = vsel %vm127_vm0, %v114_v12, 0  ;;  %145 = vmatpush.bf16.msra.mxu0 %v129_v19  ;;  %159 = vmatpush.bf16.msra.mxu1 %v132_v20  ;;  %v506_v32 = vld [vmem:[#allocation2 + $0x14] sm:$0xf0]  ;;  %v56_v33 = vld [vmem:[%s738_s2] sm:$0xff]  ;;  %v471_v37 = vor.u32 %v503_v27, %v468_v28  ;;  %v57_v41 = vld [vmem:[%s738_s2 + $0x8] sm:$0xff] }
   0xd   :  { %173 = vmatpush.bf16.msra.mxu2 %v135_v21  ;;  %187 = vmatpush.bf16.msra.mxu3 %v138_v22  ;;  %v504_v34 = vld [vmem:[#allocation2 + $0xc] sm:$0xf]  ;;  %v476_v35 = vld [vmem:[#allocation2 + $0x18] sm:$0xf0]  ;;  %v475_v38 = vor.u32 %v506_v32, %v474_v29  ;;  %v502_v40 = vld [vmem:[%s737_s1] sm:$0xff]  ;;  %vm123_vm1 = vcmask 293888  }
   0xe   :  { %60 = vperm.xlu0 %520, %v56_v33   ;;  %v479_v39 = vor.u32 %v504_v34, %v476_v35  ;;  %v249_v11 = vld [vmem:[%s739_s3] sm:$0xff]  ;;  %vm214_vm2 = vcmask 7168   ;;  %v282_v15 = vld [vmem:[%s741_s5 + $0x18] sm:$0xff]  ;;  %v281_v16 = vld [vmem:[%s741_s5 + $0x10] sm:$0xff]  ;;  %vm254_vm3 = vcmask 64512   ;;  %vm287_vm4 = vcmask 261120  }
   0xf   :  { %v280_v17 = vld [vmem:[%s741_s5 + $0x8] sm:$0xff]  ;;  %v279_v20 = vld [vmem:[%s741_s5] sm:$0xff]  ;;  %s588_s24 = smov 120   ;;  %s589_s5 = smov 8  }
  0x10   :  { %146 = vmatpush.bf16.msra.mxu0 %v483_v25  ;;  %160 = vmatpush.bf16.msra.mxu1 %v487_v26  ;;  %v524_v21 = vld [vmem:[%s740_s4] ss:$0 sm:$0xff]  ;;  %s591_s4 = smov [#allocation5]   ;;  %s447_s27 = sshll.u32 %s743_s7, 4  ;;  %s448_s27 = int_to_ptr.hbm [resolvable:$true] %s447_s27 }
  0x11   :  { %174 = vmatpush.bf16.msra.mxu2 %v491_v30  ;;  %188 = vmatpush.bf16.msra.mxu3 %v495_v31  ;;  %v525_v25 = vld [vmem:[%s742_s6] ss:$0 sm:$0xff]  ;;  %s445_s6 = sshll.u32 %s591_s4, 4  ;;  %s446_s6 = int_to_ptr.vmem [resolvable:$true] %s445_s6 }
  0x14   :  { %147 = vmatpush.bf16.msra.mxu0 %v467_v36  ;;  %161 = vmatpush.bf16.msra.mxu1 %v471_v37 }
  0x15   :  { %175 = vmatpush.bf16.msra.mxu2 %v475_v38  ;;  %189 = vmatpush.bf16.msra.mxu3 %v479_v39 }
  0x16   :  { %65 = vperm.xlu0 %520, %v57_v41   ;;  %v590_v41 = vmov 1  }
  0x17   :  { %496 = vmatmul.msk.bf16.vlgmr.msra.gmra.mxu0 %vm123_vm1, %v502_v40  ;;  %497 = vmatmul.msk.bf16.vlgmr.msra.gmra.mxu1 %vm123_vm1, %v502_v40 }
  0x18   :  { %498 = vmatmul.msk.bf16.vlgmr.msra.gmra.mxu2 %vm123_vm1, %v502_v40  ;;  %499 = vmatmul.msk.bf16.vlgmr.msra.gmra.mxu3 %vm123_vm1, %v502_v40 }
  0x19   :  { %273 = vmatpush.msrb.mxu0 %v249_v11  ;;  %303 = vmatpush.msrb.mxu1 %v282_v15 }
  0x1b   :  { %304 = vmatpush.msrb.mxu1 %v281_v16 }
  0x1d   :  { %305 = vmatpush.msrb.mxu1 %v280_v17 }
  0x1f   :  { %306 = vmatpush.msrb.mxu1 %v279_v20 }
  0x80   :  { %v61_v42 = vpop.permute.xlu0 %60 }
  0x88   :  { %v66_v45 = vpop.permute.xlu0 %65 }
  0x94   :  { %v149_v43 = vpop.f32.mrf.mxu0  ;;  %v163_v44 = vpop.f32.mrf.mxu1 }
  0x95   :  { %v652_v46 = vadd.f32 %v149_v43, %v61_v42  ;;  %v654_v47 = vadd.f32 %v163_v44, %v61_v42 }
  0x97   :  { %v196_v54 = vmax.f32 %v652_v46, 0.0  ;;  %v197_v55 = vmax.f32 %v654_v47, 0.0 }
  0x9b   :  { %v177_v48 = vpop.f32.mrf.mxu2  ;;  %v191_v49 = vpop.f32.mrf.mxu3 }
  0x9c   :  { %v151_v50 = vpop.f32.mrf.mxu0  ;;  %v165_v51 = vpop.f32.mrf.mxu1  ;;  %v672_v60 = vadd.f32 %v177_v48, %v61_v42  ;;  %v674_v61 = vadd.f32 %v191_v49, %v61_v42 }
  0x9d   :  { %v656_v52 = vadd.f32 %v151_v50, %v66_v45  ;;  %v658_v53 = vadd.f32 %v165_v51, %v66_v45 }
  0x9e   :  { %v198_v4 = vmax.f32 %v672_v60, 0.0  ;;  %v199_v5 = vmax.f32 %v674_v61, 0.0 }
  0x9f   :  { %v200_v56 = vmax.f32 %v656_v52, 0.0  ;;  %v201_v57 = vmax.f32 %v658_v53, 0.0 }
  0xa1   :  { %v204_v58 = vadd.f32 %v200_v56, %v196_v54  ;;  %v205_v59 = vadd.f32 %v201_v57, %v197_v55 }
  0xa3   :  { %v179_v62 = vpop.f32.mrf.mxu2  ;;  %v193_v63 = vpop.f32.mrf.mxu3  ;;  %v208_v1 = vadd.f32 %v205_v59, %v204_v58 }
  0xa4   :  { %v676_v2 = vadd.f32 %v179_v62, %v66_v45  ;;  %v678_v3 = vadd.f32 %v193_v63, %v66_v45 }
  0xa5   :  { %209 = vadd.xlane.f32.xlu1 %v208_v1 }
  0xa6   :  { %v202_v6 = vmax.f32 %v676_v2, 0.0  ;;  %v203_v7 = vmax.f32 %v678_v3, 0.0 }
  0xa8   :  { %v206_v8 = vadd.f32 %v202_v6, %v198_v4  ;;  %v207_v9 = vadd.f32 %v203_v7, %v199_v5 }
  0xaa   :  { %v211_v10 = vadd.f32 %v207_v9, %v206_v8 }
  0xad   :  { %212 = vadd.xlane.f32.xlu1 %v211_v10 }
 0x118   :  { %v210_v12 = vpop.xlane.xlu1 %209 }
 0x120   :  { %v213_v13 = vpop.xlane.xlu1 %212 }
 0x121   :  { %v215_v14 = vsel %vm214_vm2, %v210_v12, %v213_v13 }
 0x122   :  { %216 = vxpose.xlu2.b32.start.end [1/1] (short) (narrow) %v215_v14, 8 }
 0x184   :  { %522 = vset.pattern.permute.xlu2 %v590_v41 }
 0x1bb   :  { %v232_v18 = vpop.trf.xlu2 }
 0x1bc   :  { %v248_v19 = vmul.f32 0.00390625, %v232_v18 }
 0x1be   :  { %500 = vmatmul.msk.f32.vlgmr.msrb.gmra.mxu0 %vm254_vm3, %v248_v19 }
 0x23b   :  { %v275_v22 = vpop.f32.mrf.mxu0 }
 0x23c   :  { %v276_v23 = vadd.f32 %v524_v21, %v275_v22 }
 0x23e   :  { %v278_v24 = vmax.f32 %v276_v23, 0.0 }
 0x240   :  { %501 = vmatmul.msk.f32.vlgmr.msrb.gmra.mxu1 %vm287_vm4, %v278_v24 }
 0x2bd   :  { %v308_v26 = vpop.f32.mrf.mxu1 }
 0x2be   :  { %v309_v27 = vadd.f32 %v525_v25, %v308_v26 }
 0x2c0   :  { %312 = vrot.lane.b32.xlu2 %v309_v27, %s588_s24 }
 0x31a   :  { %v313_v28 = vpop.permute.xlu2 %312 }
 0x31b   :  { %v315_v29 = vmax.f32 %v309_v27, %v313_v28 }
 0x31d   :  { %320 = vrot.lane.b32.xlu0 %v315_v29, %s589_s5  ;;  %v316_v34 = vsub.f32 %v309_v27, %v315_v29 }
 0x31f   :  { %v317_v35 = vmul.f32 1.442695, %v316_v34 }
 0x38f   :  { %v321_v30 = vpop.permute.xlu0 %320 }
 0x390   :  { %v323_v31 = vsub.f32 %v309_v27, %v321_v30 }
 0x392   :  { %v324_v32 = vmul.f32 1.442695, %v323_v31 }
 0x394   :  { %526 = vpow2.f32 %v324_v32 }
 0x395   :  { %528 = vpow2.f32 %v317_v35 }
 0x39a   :  { %v527_v33 = vpop.eup %526 }
 0x39b   :  { %327 = vrot.lane.b32.xlu1 %v527_v33, %s588_s24  ;;  %v529_v36 = vpop.eup %528 }
 0x40d   :  { %v328_v37 = vpop.permute.xlu1 %327 }
 0x40e   :  { %v330_v38 = vadd.f32 %v529_v36, %v328_v37 }
 0x410   :  { %530 = vrcp.f32 %v330_v38 }
 0x416   :  { %v531_v39 = vpop.eup %530 }
 0x417   :  { %334 = vrot.lane.b32.xlu0 %v531_v39, %s589_s5  ;;  %v332_v40 = vmul.f32 %v531_v39, %v529_v36 }
 0x439   :  { %338 = vxpose.xlu0.b32.start.end [1/1] (short) (narrow) %v332_v40, 8 }
 0x489   :  { %v335_v42 = vpop.permute.xlu0 %334 }
 0x48a   :  { %v337_v43 = vmul.f32 %v527_v33, %v335_v42 }
 0x48c   :  { %371 = vrot.lane.b32.xlu1 %v337_v43, %s588_s24 }
 0x4dd   :  { %v354_v44 = vpop.trf.xlu0 }
 0x4de   :  { %425 = vperm.xlu2 %522, %v354_v44   ;;  %408 = vperm.xlu0 %520, %v354_v44  }
 0x4e6   :  { %523 = vset.pattern.permute.xlu0 %v590_v41 }
 0x4fe   :  { %v372_v45 = vpop.permute.xlu1 %371 }
 0x4ff   :  { %374 = vxpose.xlu1.b32.start.end [1/1] (short) (narrow) %v372_v45, 8 }
 0x538   :  { %v426_v49 = vpop.permute.xlu2 %425 }
 0x539   :  { %v428_v51 = vmul.f32 %v426_v49, %v198_v4  ;;  %v429_v58 = vmul.f32 %v426_v49, %v199_v5 }
 0x552   :  { %521 = vset.pattern.permute.xlu1 %v587_v0  ;;  %v409_v0 = vpop.permute.xlu0 %408 }
 0x553   :  { %v411_v9 = vmul.f32 %v409_v0, %v196_v54  ;;  %v412_v60 = vmul.f32 %v409_v0, %v197_v55 }
 0x5a3   :  { %v390_v48 = vpop.trf.xlu1 }
 0x5a4   :  { %415 = vperm.xlu1 %521, %v390_v48   ;;  %431 = vperm.xlu2 %522, %v390_v48  }
 0x5fe   :  { %v432_v50 = vpop.permute.xlu2 %431 }
 0x5ff   :  { %v434_v59 = vmul.f32 %v432_v50, %v202_v6  ;;  %v435_v62 = vmul.f32 %v432_v50, %v203_v7 }
 0x601   :  { %v436_v63 = vadd.f32 %v434_v59, %v428_v51  ;;  %v437_v1 = vadd.f32 %v435_v62, %v429_v58 }
 0x603   :  { %439 = vst [vmem:[#allocation5 + $0x10] sm:$0xff] %v436_v63 }
 0x604   :  { %440 = vst [vmem:[#allocation5 + $0x18] sm:$0xff] %v437_v1 }
 0x616   :  { %v416_v8 = vpop.permute.xlu1 %415 }
 0x617   :  { %v418_v61 = vmul.f32 %v416_v8, %v200_v56  ;;  %v419_v2 = vmul.f32 %v416_v8, %v201_v57 }
 0x619   :  { %v420_v3 = vadd.f32 %v418_v61, %v411_v9  ;;  %v421_v4 = vadd.f32 %v419_v2, %v412_v60 }
 0x61b   :  { %422 = vst [vmem:[#allocation5] sm:$0xff] %v420_v3 }
 0x61c   :  { %423 = vst [vmem:[#allocation5 + $0x8] sm:$0xff] %v421_v4 }
 0x61d   :  { %453 = dma.vmem_to_hbm [thread:$0]  %s446_s6, 512, %s448_s27, [#allocation4], %s585_s29, %s585_s29, %s586_s30  }
 0x61e   :  { %582 = dma.done.wait [#allocation4], 512  }
 0x61f   :  { %583 = vsyncadd [#allocation4], 4294966784 }
 0x620   :  { %458 = vsyncpa [#allocation3], 1 }
 0x621   :  { %459 = vsyncpa [#allocation4], 1 }

</bundles_post_ra>
